<compile_context>
chip_gen: v7x
topology: tpu7x:2x2x1
jax: 0.10.0
libtpu: 0.0.40
codegen_flags: <defaults>
</compile_context>

<pallas_src>
import jax
import jax.numpy as jnp
from jax import lax
from jax.experimental import pallas as pl
from jax.experimental.pallas import tpu as pltpu


def _make_kernel(H, W, C, PAD):
    HW = H * W

    def kernel(x_ref, w_ref, b_ref, o_ref, pad_ref, patch_ref):
        # x_ref    : (1, C, HW)       one image, NCHW flattened over spatial (lane-dense)
        # w_ref    : (C, 9*C)         weights as (Cout, (ky, kx, Cin)) for the im2col matmul
        # b_ref    : (C, 1)           conv bias
        # o_ref    : (1, C, HW)       output (lane-dense last dim)
        # pad_ref  : (C, HW + 2*PAD)  scratch: flat image with a zero halo on the lane axis
        # patch_ref: (9*C, HW)        scratch: im2col patches (tap-major, Cin-minor rows)
        xf = x_ref[0].astype(jnp.float32)                     # (C, HW); reused as residual

        # Zero only the halo; re-done every step (safe under a "parallel" batch axis where
        # each core has its own scratch).  The interior [PAD, PAD+HW) is overwritten below.
        pad_ref[:, :PAD] = jnp.zeros((C, PAD), jnp.float32)
        pad_ref[:, PAD + HW:] = jnp.zeros((C, PAD), jnp.float32)
        pad_ref[:, PAD:PAD + HW] = xf                         # lane-aligned (PAD % 128 == 0)

        # In-kernel column-validity masks (remove row wrap-around for kx = 0 / 2).
        col = lax.broadcasted_iota(jnp.int32, (1, HW), 1) % W
        mask_l = (col >= 1).astype(jnp.float32)               # kx == 0 reads column w-1
        mask_r = (col < (W - 1)).astype(jnp.float32)          # kx == 2 reads column w+1

        # im2col: tap (ky, kx) of output p = h*W + w reads flat element p + (ky-1)*W + (kx-1).
        # Out-of-image rows land in the zero halo; out-of-image columns are masked.
        for ky in range(3):
            for kx in range(3):
                k = ky * 3 + kx
                s = (ky - 1) * W + (kx - 1)
                shifted = pad_ref[:, PAD + s:PAD + s + HW]    # (C, HW) static lane-offset slice
                if kx == 0:
                    shifted = shifted * mask_l
                elif kx == 2:
                    shifted = shifted * mask_r
                patch_ref[k * C:(k + 1) * C, :] = shifted

        # One fused MXU matmul: (Cout, 9*Cin) @ (9*Cin, HW) -> (Cout, HW); bias added once.
        conv = jnp.dot(w_ref[...], patch_ref[...],
                       preferred_element_type=jnp.float32) + b_ref[...]
        o_ref[0] = (jnp.maximum(conv, 0.0) + xf).astype(o_ref.dtype)

    return kernel


@jax.jit
def simple_res_block(x_nchw, weight_oihw, bias):
    """Forward of SimpleResBlock: relu(conv2d(x, w, b, padding=1)) + x.  x is NCHW."""
    N, C, H, W = x_nchw.shape
    HW = H * W
    PAD = ((W + 1 + 127) // 128) * 128       # lane-aligned zero halo, >= W + 1

    x_flat = x_nchw.reshape(N, C, HW)        # free, contiguous reshape
    # (Cout, Cin, ky, kx) -> (Cout, ky, kx, Cin) -> (Cout, 9*Cin): flat row (ky*3+kx)*C + ci
    # matches the patch-scratch row order built in the kernel.
    w2 = jnp.transpose(weight_oihw, (0, 2, 3, 1)).reshape(C, 9 * C).astype(jnp.float32)
    b2 = bias.reshape(C, 1).astype(jnp.float32)

    out_flat = pl.pallas_call(
        _make_kernel(H, W, C, PAD),
        out_shape=jax.ShapeDtypeStruct((N, C, HW), x_nchw.dtype),
        grid=(N,),
        in_specs=[
            pl.BlockSpec((1, C, HW), lambda n: (n, 0, 0)),
            pl.BlockSpec((C, 9 * C), lambda n: (0, 0)),
            pl.BlockSpec((C, 1), lambda n: (0, 0)),
        ],
        out_specs=pl.BlockSpec((1, C, HW), lambda n: (n, 0, 0)),
        scratch_shapes=[
            pltpu.VMEM((C, HW + 2 * PAD), jnp.float32),    # padded flat image
            pltpu.VMEM((9 * C, HW), jnp.float32),          # im2col patches
        ],
        compiler_params=pltpu.CompilerParams(
            dimension_semantics=("parallel",)),
    )(x_flat, w2, b2)

    # TODO(synk): for large H*W / C, tile the spatial axis into row blocks (1-row halo),
    # sized ~0.5-1 MB per step on v5e/v6e and ~1-2 MB on v7x (64 MiB VMEM; set
    # vmem_limit_bytes), keeping >=2 "parallel" blocks so both v7x TensorCores stay busy.
    return out_flat.reshape(N, C, H, W)      # free reshape back to NCHW


def _reference(x_nchw, weight_oihw, bias):
    # Pure-JAX reference: NCHW conv with padding=1, bias, ReLU, residual add.
    y = lax.conv_general_dilated(
        x_nchw, weight_oihw,
        window_strides=(1, 1), padding=((1, 1), (1, 1)),
        dimension_numbers=("NCHW", "OIHW", "NCHW"))
    y = y + bias[None, :, None, None]
    return jnp.maximum(y, 0.0) + x_nchw


if __name__ == "__main__":
    key = jax.random.PRNGKey(0)
    k_x, k_w, k_b = jax.random.split(key, 3)

    N, C, H, W = 2, 4, 16, 16
    x = jax.random.normal(k_x, (N, C, H, W), dtype=jnp.float32)
    # Deterministic "init": uniform in [-bound, bound], bound = 1/sqrt(fan_in) like Conv2d.
    fan_in = C * 3 * 3
    bound = 1.0 / (fan_in ** 0.5)
    weight = jax.random.uniform(k_w, (C, C, 3, 3), minval=-bound, maxval=bound,
                                dtype=jnp.float32)
    bias = jax.random.uniform(k_b, (C,), minval=-bound, maxval=bound, dtype=jnp.float32)

    out = simple_res_block(x, weight, bias)
    out = jax.block_until_ready(out)

    ref = _reference(x, weight, bias)
    assert out.shape == (N, C, H, W)
    assert jnp.allclose(out, ref, atol=1e-5, rtol=1e-5), "mismatch vs JAX reference"

    print("KERNEL_OK")
</pallas_src>

<mosaic_0001>
module attributes {stable_mosaic.version = 11 : i64} {
  func.func @kernel(%arg0: i32, %arg1: memref<1x4x256xf32, #tpu.memory_space<vmem>>, %arg2: memref<4x36xf32, #tpu.memory_space<vmem>>, %arg3: memref<4x1xf32, #tpu.memory_space<vmem>>, %arg4: memref<1x4x256xf32, #tpu.memory_space<vmem>>, %arg5: memref<4x512xf32, #tpu.memory_space<vmem>>, %arg6: memref<36x256xf32, #tpu.memory_space<vmem>>) attributes {dimension_semantics = [#tpu.dimension_semantics<parallel>], iteration_bounds = array<i64: 2>, scalar_prefetch = 0 : i64, scratch_operands = 2 : i64, tpu.core_type = #tpu.core_type<tc>, window_params = [{transform_indices = @transform_0, window_bounds = array<i64: 1, 4, 256>}, {pipeline_mode = #tpu.pipeline_mode<synchronous>, transform_indices = @transform_1, window_bounds = array<i64: 4, 36>}, {pipeline_mode = #tpu.pipeline_mode<synchronous>, transform_indices = @transform_2, window_bounds = array<i64: 4, 1>}, {transform_indices = @transform_3, window_bounds = array<i64: 1, 4, 256>}]} {
    %c0 = arith.constant 0 : index
    %c0_0 = arith.constant 0 : index
    %c0_1 = arith.constant 0 : index
    %0 = vector.load %arg1[%c0, %c0_0, %c0_1] : memref<1x4x256xf32, #tpu.memory_space<vmem>>, vector<1x4x256xf32>
    %1 = vector.shape_cast %0 : vector<1x4x256xf32> to vector<4x256xf32>
    %cst = arith.constant 0.000000e+00 : f32
    %2 = vector.broadcast %cst : f32 to vector<4x128xf32>
    %c0_2 = arith.constant 0 : index
    %c0_3 = arith.constant 0 : index
    %3 = vector.load %arg5[%c0_2, %c0_3] : memref<4x512xf32, #tpu.memory_space<vmem>>, vector<4x128xf32>
    tpu.vector_store %arg5[%c0_2, %c0_3], %2 {strides = array<i32>} : memref<4x512xf32, #tpu.memory_space<vmem>>, vector<4x128xf32>,
    %cst_4 = arith.constant 0.000000e+00 : f32
    %4 = vector.broadcast %cst_4 : f32 to vector<4x128xf32>
    %c0_5 = arith.constant 0 : index
    %c384 = arith.constant 384 : index
    %5 = vector.load %arg5[%c0_5, %c384] : memref<4x512xf32, #tpu.memory_space<vmem>>, vector<4x128xf32>
    tpu.vector_store %arg5[%c0_5, %c384], %4 {strides = array<i32>} : memref<4x512xf32, #tpu.memory_space<vmem>>, vector<4x128xf32>,
    %c0_6 = arith.constant 0 : index
    %c128 = arith.constant 128 : index
    %6 = vector.load %arg5[%c0_6, %c128] : memref<4x512xf32, #tpu.memory_space<vmem>>, vector<4x256xf32>
    tpu.vector_store %arg5[%c0_6, %c128], %1 {strides = array<i32>} : memref<4x512xf32, #tpu.memory_space<vmem>>, vector<4x256xf32>,
    %7 = tpu.iota {dimensions = array<i32: 1>} : vector<1x256xi32>
    %c16_i32 = arith.constant 16 : i32
    %c0_i32 = arith.constant 0 : i32
    %8 = arith.cmpi eq, %c16_i32, %c0_i32 : i32
    %c1_i32 = arith.constant 1 : i32
    %9 = arith.select %8, %c1_i32, %c16_i32 : i32
    %10 = vector.broadcast %9 : i32 to vector<1x256xi32>
    %11 = arith.remsi %7, %10 : vector<1x256xi32>
    %c0_i32_7 = arith.constant 0 : i32
    %12 = vector.broadcast %c0_i32_7 : i32 to vector<1x256xi32>
    %13 = arith.cmpi ne, %11, %12 : vector<1x256xi32>
    %c0_i32_8 = arith.constant 0 : i32
    %14 = vector.broadcast %c0_i32_8 : i32 to vector<1x256xi32>
    %15 = arith.cmpi slt, %11, %14 : vector<1x256xi32>
    %c0_i32_9 = arith.constant 0 : i32
    %16 = arith.cmpi slt, %9, %c0_i32_9 : i32
    %17 = vector.broadcast %16 : i1 to vector<1x256xi1>
    %18 = vector.broadcast %17 : vector<1x256xi1> to vector<1x256xi1>
    %19 = arith.xori %15, %18 : vector<1x256xi1>
    %20 = arith.andi %19, %13 : vector<1x256xi1>
    %21 = vector.broadcast %9 : i32 to vector<1x256xi32>
    %22 = arith.addi %11, %21 : vector<1x256xi32>
    %23 = arith.select %20, %22, %11 : vector<1x256xi1>, vector<1x256xi32>
    %c1_i32_10 = arith.constant 1 : i32
    %24 = vector.broadcast %c1_i32_10 : i32 to vector<1x256xi32>
    %25 = arith.cmpi sge, %23, %24 : vector<1x256xi32>
    %26 = arith.extui %25 : vector<1x256xi1> to vector<1x256xi32>
    %27 = arith.sitofp %26 : vector<1x256xi32> to vector<1x256xf32>
    %c15_i32 = arith.constant 15 : i32
    %28 = vector.broadcast %c15_i32 : i32 to vector<1x256xi32>
    %29 = arith.cmpi slt, %23, %28 : vector<1x256xi32>
    %30 = arith.extui %29 : vector<1x256xi1> to vector<1x256xi32>
    %31 = arith.sitofp %30 : vector<1x256xi32> to vector<1x256xf32>
    %c0_11 = arith.constant 0 : index
    %c111 = arith.constant 111 : index
    %32 = vector.load %arg5[%c0_11, %c111] : memref<4x512xf32, #tpu.memory_space<vmem>>, vector<4x256xf32>
    %33 = vector.broadcast %27 : vector<1x256xf32> to vector<4x256xf32>
    %34 = arith.mulf %32, %33 : vector<4x256xf32>
    %c0_12 = arith.constant 0 : index
    %c0_13 = arith.constant 0 : index
    %35 = vector.load %arg6[%c0_12, %c0_13] : memref<36x256xf32, #tpu.memory_space<vmem>>, vector<4x256xf32>
    tpu.vector_store %arg6[%c0_12, %c0_13], %34 {strides = array<i32>} : memref<36x256xf32, #tpu.memory_space<vmem>>, vector<4x256xf32>,
    %c0_14 = arith.constant 0 : index
    %c112 = arith.constant 112 : index
    %36 = vector.load %arg5[%c0_14, %c112] : memref<4x512xf32, #tpu.memory_space<vmem>>, vector<4x256xf32>
    %c4 = arith.constant 4 : index
    %c0_15 = arith.constant 0 : index
    %37 = vector.load %arg6[%c4, %c0_15] : memref<36x256xf32, #tpu.memory_space<vmem>>, vector<4x256xf32>
    tpu.vector_store %arg6[%c4, %c0_15], %36 {strides = array<i32>} : memref<36x256xf32, #tpu.memory_space<vmem>>, vector<4x256xf32>,
    %c0_16 = arith.constant 0 : index
    %c113 = arith.constant 113 : index
    %38 = vector.load %arg5[%c0_16, %c113] : memref<4x512xf32, #tpu.memory_space<vmem>>, vector<4x256xf32>
    %39 = vector.broadcast %31 : vector<1x256xf32> to vector<4x256xf32>
    %40 = arith.mulf %38, %39 : vector<4x256xf32>
    %c8 = arith.constant 8 : index
    %c0_17 = arith.constant 0 : index
    %41 = vector.load %arg6[%c8, %c0_17] : memref<36x256xf32, #tpu.memory_space<vmem>>, vector<4x256xf32>
    tpu.vector_store %arg6[%c8, %c0_17], %40 {strides = array<i32>} : memref<36x256xf32, #tpu.memory_space<vmem>>, vector<4x256xf32>,
    %c0_18 = arith.constant 0 : index
    %c127 = arith.constant 127 : index
    %42 = vector.load %arg5[%c0_18, %c127] : memref<4x512xf32, #tpu.memory_space<vmem>>, vector<4x256xf32>
    %43 = vector.broadcast %27 : vector<1x256xf32> to vector<4x256xf32>
    %44 = arith.mulf %42, %43 : vector<4x256xf32>
    %c12 = arith.constant 12 : index
    %c0_19 = arith.constant 0 : index
    %45 = vector.load %arg6[%c12, %c0_19] : memref<36x256xf32, #tpu.memory_space<vmem>>, vector<4x256xf32>
    tpu.vector_store %arg6[%c12, %c0_19], %44 {strides = array<i32>} : memref<36x256xf32, #tpu.memory_space<vmem>>, vector<4x256xf32>,
    %c0_20 = arith.constant 0 : index
    %c128_21 = arith.constant 128 : index
    %46 = vector.load %arg5[%c0_20, %c128_21] : memref<4x512xf32, #tpu.memory_space<vmem>>, vector<4x256xf32>
    %c16 = arith.constant 16 : index
    %c0_22 = arith.constant 0 : index
    %47 = vector.load %arg6[%c16, %c0_22] : memref<36x256xf32, #tpu.memory_space<vmem>>, vector<4x256xf32>
    tpu.vector_store %arg6[%c16, %c0_22], %46 {strides = array<i32>} : memref<36x256xf32, #tpu.memory_space<vmem>>, vector<4x256xf32>,
    %c0_23 = arith.constant 0 : index
    %c129 = arith.constant 129 : index
    %48 = vector.load %arg5[%c0_23, %c129] : memref<4x512xf32, #tpu.memory_space<vmem>>, vector<4x256xf32>
    %49 = vector.broadcast %31 : vector<1x256xf32> to vector<4x256xf32>
    %50 = arith.mulf %48, %49 : vector<4x256xf32>
    %c20 = arith.constant 20 : index
    %c0_24 = arith.constant 0 : index
    %51 = vector.load %arg6[%c20, %c0_24] : memref<36x256xf32, #tpu.memory_space<vmem>>, vector<4x256xf32>
    tpu.vector_store %arg6[%c20, %c0_24], %50 {strides = array<i32>} : memref<36x256xf32, #tpu.memory_space<vmem>>, vector<4x256xf32>,
    %c0_25 = arith.constant 0 : index
    %c143 = arith.constant 143 : index
    %52 = vector.load %arg5[%c0_25, %c143] : memref<4x512xf32, #tpu.memory_space<vmem>>, vector<4x256xf32>
    %53 = vector.broadcast %27 : vector<1x256xf32> to vector<4x256xf32>
    %54 = arith.mulf %52, %53 : vector<4x256xf32>
    %c24 = arith.constant 24 : index
    %c0_26 = arith.constant 0 : index
    %55 = vector.load %arg6[%c24, %c0_26] : memref<36x256xf32, #tpu.memory_space<vmem>>, vector<4x256xf32>
    tpu.vector_store %arg6[%c24, %c0_26], %54 {strides = array<i32>} : memref<36x256xf32, #tpu.memory_space<vmem>>, vector<4x256xf32>,
    %c0_27 = arith.constant 0 : index
    %c144 = arith.constant 144 : index
    %56 = vector.load %arg5[%c0_27, %c144] : memref<4x512xf32, #tpu.memory_space<vmem>>, vector<4x256xf32>
    %c28 = arith.constant 28 : index
    %c0_28 = arith.constant 0 : index
    %57 = vector.load %arg6[%c28, %c0_28] : memref<36x256xf32, #tpu.memory_space<vmem>>, vector<4x256xf32>
    tpu.vector_store %arg6[%c28, %c0_28], %56 {strides = array<i32>} : memref<36x256xf32, #tpu.memory_space<vmem>>, vector<4x256xf32>,
    %c0_29 = arith.constant 0 : index
    %c145 = arith.constant 145 : index
    %58 = vector.load %arg5[%c0_29, %c145] : memref<4x512xf32, #tpu.memory_space<vmem>>, vector<4x256xf32>
    %59 = vector.broadcast %31 : vector<1x256xf32> to vector<4x256xf32>
    %60 = arith.mulf %58, %59 : vector<4x256xf32>
    %c32 = arith.constant 32 : index
    %c0_30 = arith.constant 0 : index
    %61 = vector.load %arg6[%c32, %c0_30] : memref<36x256xf32, #tpu.memory_space<vmem>>, vector<4x256xf32>
    tpu.vector_store %arg6[%c32, %c0_30], %60 {strides = array<i32>} : memref<36x256xf32, #tpu.memory_space<vmem>>, vector<4x256xf32>,
    %c0_31 = arith.constant 0 : index
    %c0_32 = arith.constant 0 : index
    %62 = vector.load %arg2[%c0_31, %c0_32] : memref<4x36xf32, #tpu.memory_space<vmem>>, vector<4x36xf32>
    %c0_33 = arith.constant 0 : index
    %c0_34 = arith.constant 0 : index
    %63 = vector.load %arg6[%c0_33, %c0_34] : memref<36x256xf32, #tpu.memory_space<vmem>>, vector<36x256xf32>
    %cst_35 = arith.constant dense<0.000000e+00> : vector<4x256xf32>
    %64 = tpu.matmul %62, %63, %cst_35 {dimension_numbers = #tpu.dot_dimension_numbers<[1], [0], [0], [1], [0, 0, 1, 1], [], []>} : vector<4x36xf32>, vector<36x256xf32>, vector<4x256xf32> -> vector<4x256xf32>
    %c0_36 = arith.constant 0 : index
    %c0_37 = arith.constant 0 : index
    %65 = vector.load %arg3[%c0_36, %c0_37] : memref<4x1xf32, #tpu.memory_space<vmem>>, vector<4x1xf32>
    %66 = vector.broadcast %65 : vector<4x1xf32> to vector<4x256xf32>
    %67 = arith.addf %64, %66 : vector<4x256xf32>
    %cst_38 = arith.constant 0.000000e+00 : f32
    %68 = vector.broadcast %cst_38 : f32 to vector<4x256xf32>
    %69 = arith.maximumf %67, %68 : vector<4x256xf32>
    %70 = arith.addf %69, %1 : vector<4x256xf32>
    %c0_39 = arith.constant 0 : index
    %c0_40 = arith.constant 0 : index
    %c0_41 = arith.constant 0 : index
    %71 = vector.load %arg4[%c0_39, %c0_40, %c0_41] : memref<1x4x256xf32, #tpu.memory_space<vmem>>, vector<1x4x256xf32>
    %72 = vector.shape_cast %71 : vector<1x4x256xf32> to vector<4x256xf32>
    %73 = vector.shape_cast %70 : vector<4x256xf32> to vector<1x4x256xf32>
    tpu.vector_store %arg4[%c0_39, %c0_40, %c0_41], %73 {strides = array<i32>} : memref<1x4x256xf32, #tpu.memory_space<vmem>>, vector<1x4x256xf32>,
    return
  }
  func.func @transform_0(%arg0: i32) -> (i32, i32, i32) {
    %c0_i32 = arith.constant 0 : i32
    %c0_i32_0 = arith.constant 0 : i32
    %c0_i32_1 = arith.constant 0 : i32
    return %arg0, %c0_i32, %c0_i32_0 : i32, i32, i32
  }
  func.func @transform_1(%arg0: i32) -> (i32, i32) {
    %c0_i32 = arith.constant 0 : i32
    %c0_i32_0 = arith.constant 0 : i32
    %c0_i32_1 = arith.constant 0 : i32
    return %c0_i32, %c0_i32_0 : i32, i32
  }
  func.func @transform_2(%arg0: i32) -> (i32, i32) {
    %c0_i32 = arith.constant 0 : i32
    %c0_i32_0 = arith.constant 0 : i32
    %c0_i32_1 = arith.constant 0 : i32
    return %c0_i32, %c0_i32_0 : i32, i32
  }
  func.func @transform_3(%arg0: i32) -> (i32, i32, i32) {
    %c0_i32 = arith.constant 0 : i32
    %c0_i32_0 = arith.constant 0 : i32
    %c0_i32_1 = arith.constant 0 : i32
    return %arg0, %c0_i32, %c0_i32_0 : i32, i32, i32
  }
}

</mosaic_0001>

<bundles_post_ra>
// kernel: simple_res_block.1
= control target key start
LH: loop header
LB: loop body
LE: loop exit
PB: predicated region body
PF: predicated region fallthrough
CT: control target
= control target key end

     0   :  { %s678_s12 = smov 0   ;;  %s778_s0 = inlined_call_operand.vmem [shape: f32[2,4,256], index: 0, kind: input, shape index: {}]   ;;  %s779_s1 = inlined_call_operand.vmem [shape: f32[4,36], index: 1, kind: input, shape index: {}]   ;;  %s780_s2 = inlined_call_operand.vmem [shape: f32[4,1], index: 2, kind: input, shape index: {}]   ;;  %s781_s3 = inlined_call_operand.vmem [shape: f32[2,4,256], index: 3, kind: output, shape index: {}]  }
   0x1 LB: > { %s588_s13 = sadd.s32 4294967295, %s646_s12   ;;  %p592_p0 = scmp.ge.s32.totalorder %s646_s12, 1  ;;  %s646_s12 = sphi %s678_s12, %s13_s12  }
   0x2   : > { %p137_p1 = scmp.lt.s32.totalorder %s646_s12, 3 }
   0x4   : > { %p138_p2 = pnand %p592_p0, %p137_p1 }
   0x5   : > { %v175_v0 = vlaneseq (!%p138_p2)  ;;  %v648_v1 = vmov (!%p138_p2), 0.0   ;;  %p161_p3 = scmp.lt.s32.totalorder (!%p138_p2), %s588_s13, 1  ;;  %s649_s18 = smov (!%p138_p2), 127   ;;  %vm298_vm4 = vcmask (!%p138_p2), 1039360   ;;  %vm222_vm5 = vcmask (!%p138_p2), 908288  }
   0x6   : > { %141 = sbr.rel (%p138_p2) target bundleno = 522 (0x20a), region = 32  ;;  %172 = vst [vmem:[#allocation2] sm:$0xf] (!%p138_p2), %v648_v1  ;;  %173 = vst [vmem:[#allocation2 + $0xc] sm:$0xf] (!%p138_p2), %v648_v1  ;;  %514 = vmatprep.mubr.f32.mxu0 (!%p138_p2), %v648_v1  ;;  %s650_s19 = smov (!%p138_p2), 111  }
   0x7   : > { %v176_v2 = vand.u32 (!%p138_p2), 127, %v175_v0  ;;  %s651_s20 = smov (!%p138_p2), 113   ;;  %s652_s21 = smov (!%p138_p2), 15   ;;  %vm271_vm6 = vcmask (!%p138_p2), 924672   ;;  %vm314_vm7 = vcmask (!%p138_p2), 7168   ;;  %vm256_vm8 = vcmask (!%p138_p2), 130048  }
   0x8   : > { %s653_s22 = smov (!%p138_p2), 1   ;;  %s654_s23 = smov (!%p138_p2), 17   ;;  %vm286_vm9 = vcmask (!%p138_p2), 121856   ;;  %vm390_vm10 = vcmask (!%p138_p2), 916480   ;;  %vm237_vm11 = vcmask (!%p138_p2), 138240   ;;  %vm443_vm12 = vcmask (!%p138_p2), 1043456  }
   0x9   : > { %v177_v3 = vadd.s32 (!%p138_p2), 128, %v176_v2  ;;  %v182_v4 = vand.u32 (!%p138_p2), 15, %v176_v2  ;;  %s655_s24 = smov (!%p138_p2), 16   ;;  %s656_s25 = smov (!%p138_p2), 112   ;;  %vm439_vm13 = vcmask (!%p138_p2), 293888  }
   0xb   : > { %v189_v5 = vand.u32 (!%p138_p2), 15, %v177_v3  ;;  %vm202_vm0 = vcmp.ge.s32.totalorder (!%p138_p2), %v182_v4, 1  ;;  %vm208_vm1 = vcmp.lt.s32.totalorder (!%p138_p2), %v182_v4, 15 }
   0xc   : > { %v597_v6 = vsel (!%p138_p2), %vm202_vm0, 1.0, %v648_v1  ;;  %v599_v8 = vsel (!%p138_p2), %vm208_vm1, 1.0, %v648_v1 }
   0xd   : > { %s783_s13 = smov (!%p161_p3, %s588_s13), 1  ;;  %vm203_vm2 = vcmp.ge.s32.totalorder %v189_v5, 1  ;;  %vm209_vm3 = vcmp.lt.s32.totalorder %v189_v5, 15  ;;  %v637_v16 = vld [vmem:[#allocation2 + $0xc] ss:$0 sps:$4 sm:$0xff]  }
   0xe   : > { %s606_s14 = sshll.u32 %s783_s13, 3  ;;  %v598_v7 = vsel %vm203_vm2, 1.0, %v648_v1  ;;  %v600_v9 = vsel %vm209_vm3, 1.0, %v648_v1  ;;  %v354_v31 = vld [vmem:[#allocation2 + $0xc] sm:$0xf] }
   0xf   : > { %s165_s17 = scalar_lea.vmem %s778_s0, %s606_s14  ;;  %v218_v11 = vcombine.low %v597_v6, %v598_v7  ;;  %v267_v12 = vcombine.low %v599_v8, %v600_v9  ;;  %v328_v43 = vld [vmem:[#allocation2 + $0xc] sm:$0xf]  ;;  %v657_v7 = vmov 0   ;;  %v433_v8 = vld [vmem:[%s780_s2] sm:$0xf]  ;;  %s170_s5 = scalar_lea.vmem %s781_s3, %s606_s14 }
  0x10   : > { %v694_v10 = vld [vmem:[%s165_s17] sm:$0xff]  ;;  %v398_v5 = vld [vmem:[#allocation2 + $0xc] sm:$0xf]  ;;  %634 = vset.pattern.permute.xlu0 %v657_v7 }
  0x11   : > { %174 = vst [vmem:[#allocation2 + $0x4] sm:$0xff] %v694_v10  ;;  %325 = vst [vmem:[#allocation3 + $0x20] sm:$0xf] %v694_v10  ;;  %295 = vrot.lane.b32.xlu1 %v218_v11, %s649_s18  ;;  %219 = vrot.lane.b32.xlu0 %v218_v11, %s650_s19  ;;  %v713_v37 = vcombine.high %v694_v10, %v694_v10  ;;  %v382_v4 = vcombine.low %v694_v10, %v694_v10 }
  0x13   : > { %326 = vst [vmem:[#allocation3 + $0x28] sm:$0xf] %v713_v37 }
  0x15   : > { %268 = vrot.lane.b32.xlu0 %v267_v12, %s651_s20  ;;  %355 = vrot.lane.b32.xlu1 %v218_v11, %s652_s21 }
  0x18   : > { %v635_v13 = vld [vmem:[#allocation2 + $0x8] ss:$0 sps:$4 sm:$0xff]   ;;  %v244_v14 = vld [vmem:[#allocation2] sm:$0xff] }
  0x19   : > { %329 = vrot.lane.b32.xlu0 %v267_v12, %s653_s22  ;;  %399 = vrot.lane.b32.xlu1 %v267_v12, %s654_s23  ;;  %v248_v15 = vcombine.low %v244_v14, %v244_v14  ;;  %v215_v19 = vld [vmem:[#allocation2 + $0x8] sm:$0xf] }
  0x1a   : > { %v264_v26 = vld [vmem:[#allocation2 + $0x8] sm:$0xf] }
  0x1b   : > { %v294_v33 = vld [vmem:[#allocation2 + $0x8] sm:$0xf] }
  0x1d   : > { %254 = vrot.lane.b32.xlu1 %v635_v13, %s655_s24  ;;  %252 = vrot.lane.b32.xlu0 %v244_v14, %s655_s24 }
  0x21   : > { %250 = vrot.lane.b32.xlu1 %v248_v15, %s655_s24  ;;  %386 = vrot.lane.b32.xlu0 %v694_v10, %s656_s25 }
  0x25   : > { %388 = vrot.lane.b32.xlu1 %v637_v16, %s656_s25 }
  0x83   : > { %v296_v17 = vpop.permute.xlu1 %295  ;;  %v220_v18 = vpop.permute.xlu0 %219 }
  0x84   : > { %v297_v20 = vrot.slane %v296_v17, 4  ;;  %v221_v21 = vrot.slane %v220_v18, 4 }
  0x86   : > { %v299_v22 = vsel %vm298_vm4, %v297_v20, %v296_v17  ;;  %v227_v23 = vmul.f32 %v221_v21, %v215_v19  ;;  %v223_v28 = vsel %vm222_vm5, %v221_v21, %v220_v18  ;;  %v303_v41 = vmul.f32 %v297_v20, %v294_v33 }
  0x87   : > { %v302_v24 = vmul.f32 %v299_v22, %v244_v14  ;;  %v269_v25 = vpop.permute.xlu0 %268  ;;  %v356_v27 = vpop.permute.xlu1 %355  ;;  %v226_v34 = vmul.f32 %v244_v14, %v223_v28 }
  0x88   : > { %v270_v29 = vrot.slane %v269_v25, 4  ;;  %235 = vrot.lane.b32.xlu1 %v227_v23, %s654_s23  ;;  %v357_v30 = vrot.slane %v356_v27, 4  ;;  %v307_v49 = vcombine.low %v303_v41, %v303_v41 }
  0x89   : > { %310 = vrot.lane.b32.xlu0 %v302_v24, %s653_s22  ;;  %v230_v56 = vcombine.high %v226_v34, %v226_v34  ;;  %v306_v61 = vcombine.low %v302_v24, %v302_v24 }
  0x8a   : > { %v276_v32 = vmul.f32 %v270_v29, %v264_v26  ;;  %v272_v38 = vsel %vm271_vm6, %v270_v29, %v269_v25  ;;  %v362_v39 = vmul.f32 %v357_v30, %v354_v31  ;;  %v358_v58 = vsel %vm286_vm9, %v357_v30, %v356_v27 }
  0x8b   : > { %v330_v35 = vpop.permute.xlu0 %329  ;;  %v400_v36 = vpop.permute.xlu1 %399  ;;  %v275_v42 = vmul.f32 %v272_v38, %v244_v14  ;;  %v361_v62 = vmul.f32 %v358_v58, %v694_v10 }
  0x8c   : > { %284 = vrot.lane.b32.xlu1 %v276_v32, %s652_s21  ;;  %v331_v40 = vrot.slane %v330_v35, 4  ;;  %v401_v53 = vrot.slane %v400_v36, 4 }
  0x8d   : > { %231 = vrot.lane.b32.xlu0 %v226_v34, %s654_s23  ;;  %v279_v63 = vcombine.high %v275_v42, %v275_v42  ;;  %v365_v1 = vcombine.high %v361_v62, %v361_v62 }
  0x8e   : > { %v332_v46 = vsel %vm314_vm7, %v331_v40, %v330_v35  ;;  %v336_v48 = vmul.f32 %v331_v40, %v328_v43  ;;  %v402_v60 = vsel %vm237_vm11, %v401_v53, %v400_v36  ;;  %v406_v6 = vmul.f32 %v401_v53, %v398_v5 }
  0x8f   : > { %v255_v44 = vpop.permute.xlu1 %254  ;;  %v253_v45 = vpop.permute.xlu0 %252  ;;  %v335_v50 = vmul.f32 %v332_v46, %v694_v10  ;;  %v405_v0 = vmul.f32 %v402_v60, %v694_v10 }
  0x90   : > { %370 = vrot.lane.b32.xlu1 %v362_v39, %s651_s20  ;;  %v258_v47 = vsel %vm256_vm8, %v253_v45, %v255_v44  ;;  %v340_v55 = vcombine.low %v336_v48, %v336_v48 }
  0x91   : > { %280 = vrot.lane.b32.xlu0 %v275_v42, %s652_s21  ;;  %262 = vst [vmem:[#allocation3 + $0x8] sm:$0xf0] %v258_v47  ;;  %v409_v2 = vcombine.high %v405_v0, %v405_v0  ;;  %v339_v3 = vcombine.low %v335_v50, %v335_v50 }
  0x93   : > { %v251_v51 = vpop.permute.xlu1 %250  ;;  %v727_v54 = vpop.permute.xlu0 %386 }
  0x94   : > { %312 = vrot.lane.b32.xlu1 %v307_v49, %s653_s22  ;;  %v257_v52 = vsel %vm256_vm8, %v251_v51, %v253_v45 }
  0x95   : > { %343 = vrot.lane.b32.xlu0 %v335_v50, %s649_s18  ;;  %261 = vst [vmem:[#allocation3] sm:$0xf0] %v257_v52 }
  0x97   : > { %v389_v57 = vpop.permute.xlu1 %388 }
  0x98   : > { %345 = vrot.lane.b32.xlu1 %v340_v55, %s649_s18  ;;  %v392_v59 = vsel %vm390_vm10, %v727_v54, %v389_v57 }
  0x99   : > { %233 = vrot.lane.b32.xlu0 %v230_v56, %s654_s23  ;;  %396 = vst [vmem:[#allocation3 + $0x38] sm:$0xf0] %v392_v59 }
  0x9c   : > { %308 = vrot.lane.b32.xlu1 %v306_v61, %s653_s22 }
  0x9d   : > { %282 = vrot.lane.b32.xlu0 %v279_v63, %s652_s21 }
  0xa0   : > { %366 = vrot.lane.b32.xlu1 %v361_v62, %s651_s20 }
  0xa1   : > { %368 = vrot.lane.b32.xlu0 %v365_v1, %s651_s20 }
  0xa4   : > { %412 = vrot.lane.b32.xlu1 %v409_v2, %s650_s19 }
  0xa5   : > { %341 = vrot.lane.b32.xlu0 %v339_v3, %s649_s18 }
  0xa8   : > { %410 = vrot.lane.b32.xlu1 %v405_v0, %s650_s19 }
  0xa9   : > { %384 = vrot.lane.b32.xlu0 %v382_v4, %s656_s25 }
  0xad   : > { %414 = vrot.lane.b32.xlu0 %v406_v6, %s650_s19 }
  0xb1   : > { %436 = vperm.xlu0 %634, %v433_v8  }
  0xfa   : > { %v236_v9 = vpop.permute.xlu1 %235 }
  0xfb   : > { %v311_v11 = vpop.permute.xlu0 %310 }
  0xfe   : > { %v285_v12 = vpop.permute.xlu1 %284 }
  0xff   : > { %v232_v13 = vpop.permute.xlu0 %231 }
 0x102   : > { %v371_v14 = vpop.permute.xlu1 %370 }
 0x103   : > { %v281_v15 = vpop.permute.xlu0 %280 }
 0x106   : > { %v313_v16 = vpop.permute.xlu1 %312 }
 0x107   : > { %v316_v17 = vsel %vm314_vm7, %v311_v11, %v313_v16  ;;  %v344_v18 = vpop.permute.xlu0 %343 }
 0x108   : > { %320 = vst [vmem:[#allocation3 + $0x18] sm:$0xf0] %v316_v17 }
 0x10a   : > { %v346_v19 = vpop.permute.xlu1 %345 }
 0x10b   : > { %v348_v20 = vsel %vm298_vm4, %v344_v18, %v346_v19  ;;  %v234_v21 = vpop.permute.xlu0 %233 }
 0x10c   : > { %352 = vst [vmem:[#allocation3 + $0x28] sm:$0xf0] %v348_v20  ;;  %v238_v22 = vsel %vm237_vm11, %v232_v13, %v234_v21  ;;  %v239_v23 = vsel %vm237_vm11, %v234_v21, %v236_v9 }
 0x10d   : > { %242 = vst [vmem:[#allocation3] sm:$0xf] %v238_v22  ;;  %243 = vst [vmem:[#allocation3 + $0x8] sm:$0xf] %v239_v23 }
 0x10e   : > { %v309_v24 = vpop.permute.xlu1 %308 }
 0x10f   : > { %v315_v25 = vsel %vm314_vm7, %v309_v24, %v311_v11  ;;  %v283_v26 = vpop.permute.xlu0 %282 }
 0x110   : > { %319 = vst [vmem:[#allocation3 + $0x10] sm:$0xf0] %v315_v25  ;;  %v287_v27 = vsel %vm286_vm9, %v281_v15, %v283_v26  ;;  %v288_v28 = vsel %vm286_vm9, %v283_v26, %v285_v12 }
 0x111   : > { %291 = vst [vmem:[#allocation3 + $0x10] sm:$0xf] %v287_v27  ;;  %292 = vst [vmem:[#allocation3 + $0x18] sm:$0xf] %v288_v28 }
 0x112   : > { %v367_v29 = vpop.permute.xlu1 %366 }
 0x113   : > { %v369_v30 = vpop.permute.xlu0 %368  ;;  %v428_v47 = vld [vmem:[#allocation3 + $0x28] sm:$0xff] }
 0x114   : > { %v372_v31 = vsel %vm271_vm6, %v367_v29, %v369_v30  ;;  %v373_v32 = vsel %vm271_vm6, %v369_v30, %v371_v14  ;;  %v424_v35 = vld [vmem:[#allocation3 + $0x8] sm:$0xff]  ;;  %v423_v39 = vld [vmem:[#allocation3] sm:$0xff] }
 0x115   : > { %376 = vst [vmem:[#allocation3 + $0x30] sm:$0xf] %v372_v31  ;;  %377 = vst [vmem:[#allocation3 + $0x38] sm:$0xf] %v373_v32 }
 0x116   : > { %v413_v33 = vpop.permute.xlu1 %412 }
 0x117   : > { %v342_v34 = vpop.permute.xlu0 %341 }
 0x118   : > { %v347_v36 = vsel %vm298_vm4, %v342_v34, %v344_v18  ;;  %v426_v38 = vld [vmem:[#allocation3 + $0x18] sm:$0xff]  ;;  %v425_v40 = vld [vmem:[#allocation3 + $0x10] sm:$0xff] }
 0x119   : > { %351 = vst [vmem:[#allocation3 + $0x20] sm:$0xf0] %v347_v36  ;;  %v608_v41 = vpack.c.bf16 %v426_v38, %v424_v35  ;;  %v610_v42 = vpack.c.bf16 %v425_v40, %v423_v39 }
 0x11a   : > { %v411_v43 = vpop.permute.xlu1 %410 }
 0x11b   : > { %v416_v44 = vsel %vm222_vm5, %v411_v43, %v413_v33  ;;  %609 = vmatprep.subr.bf16.mxu0 %v608_v41  ;;  %v385_v45 = vpop.permute.xlu0 %384 }
 0x11c   : > { %420 = vst [vmem:[#allocation3 + $0x40] sm:$0xf] %v416_v44  ;;  %v391_v46 = vsel %vm390_vm10, %v385_v45, %v727_v54  ;;  %611 = vmatpush1.bf16.msra.mxu0 %v610_v42  ;;  %v430_v48 = vld [vmem:[#allocation3 + $0x38] sm:$0xff]  ;;  %v422_v54 = vld [vmem:[%s779_s1] sm:$0xf] }
 0x11d   : > { %395 = vst [vmem:[#allocation3 + $0x30] sm:$0xf0] %v391_v46  ;;  %v612_v49 = vpack.c.bf16 %v430_v48, %v428_v47 }
 0x11f   : > { %613 = vmatprep.subr.bf16.mxu0 %v612_v49  ;;  %v415_v50 = vpop.permute.xlu0 %414 }
 0x120   : > { %v417_v51 = vsel %vm222_vm5, %v413_v33, %v415_v50  ;;  %v427_v52 = vld [vmem:[#allocation3 + $0x20] sm:$0xff] }
 0x121   : > { %421 = vst [vmem:[#allocation3 + $0x48] sm:$0xf] %v417_v51 }
 0x123   : > { %v431_v57 = vld [vmem:[#allocation3 + $0x40] sm:$0xf] }
 0x124   : > { %v429_v53 = vld [vmem:[#allocation3 + $0x30] sm:$0xff] }
 0x125   : > { %v614_v55 = vpack.c.bf16 %v429_v53, %v427_v52 }
 0x127   : > { %615 = vmatpush1.bf16.msra.mxu0 %v614_v55 }
 0x128   : > { %v432_v56 = vld [vmem:[#allocation3 + $0x48] sm:$0xf] }
 0x129   : > { %601 = vmatprep.subr.msk.mxu0 %vm443_vm12, %v432_v56 }
 0x12b   : > { %602 = vmatpush1.msk.msra.mxu0 %vm443_vm12, %v431_v57 }
 0x12c   : > { %603 = vmatmul.mubr.msk.f32.vlgmr.msra.gmra.mrb[0].mxu0 %vm439_vm13, %v422_v54 }
 0x130   : > { %v437_v58 = vpop.permute.xlu0 %436 }
 0x1ff   : > { %v516_v59 = vpop.f32.mrb[0].mxu0 }
 0x200   : > { %v517_v60 = vadd.f32 %v516_v59, %v437_v58  ;;  %v518_v61 = vpop.f32.mrb[1].mxu0 }
 0x201   : > { %v519_v62 = vadd.f32 %v518_v61, %v437_v58 }
 0x202   : > { %v521_v63 = vmax.f32 %v517_v60, 0.0 }
 0x203   : > { %v522_v0 = vmax.f32 %v519_v62, 0.0 }
 0x204   : > { %v526_v1 = vadd.f32 %v521_v63, %v694_v10 }
 0x205   : > { %v527_v2 = vadd.f32 %v522_v0, %v713_v37 }
 0x207   : > { %v530_v3 = vcombine.low %v526_v1, %v527_v2 }
 0x209   : > { %532 = vst [vmem:[%s170_s5] sm:$0xff] %v530_v3 }
 0x20a PF: > { %s13_s12 = sadd.s32 1, %s646_s12  }
 0x20b   : > { %p10_p4 = scmp.ge.s32.totalorder %s13_s12, 4  }
 0x20d   :  { %12 = sbr.rel (!%p10_p4) target bundleno = 1 (0x1), region = 62 }

</bundles_post_ra>
